<compile_context>
chip_gen: v7x
topology: tpu7x:2x2x1
jax: 0.10.0
libtpu: 0.0.40
codegen_flags: <defaults>
</compile_context>

<pallas_src>
import functools

import jax
import jax.numpy as jnp
from jax import lax
from jax.experimental import pallas as pl
from jax.experimental.pallas import tpu as pltpu


# --------------------------------------------------------------------------- #
# Fused kernel: one grid step == one patch j; all batches i and heads h inside.
# --------------------------------------------------------------------------- #
def _fused_attention_kernel(x_qk_ref, x_v_ref, w_qkv_ref, w_out_ref, b_out_ref,
                            o_ref, *, b, heads, dim_head, scale, matmul_dtype):
    _, n, dim = x_qk_ref.shape            # x_qk_ref: (b, n, dim)     = x[:, j]
    inner = heads * dim_head              # x_v_ref : (heads, n, dim) = x[j]

    # ---- to_qkv for all batches & heads in ONE MXU matmul --------------------
    # (b, n, dim) -> (b*n, dim): leading-dim collapse (n multiple of 8 here, so
    # layout preserving), then a single (b*n, dim) @ (dim, 2*inner) matmul.
    x2 = x_qk_ref[...].reshape(b * n, dim).astype(matmul_dtype)
    qk = jnp.dot(x2, w_qkv_ref[...].astype(matmul_dtype),
                 preferred_element_type=jnp.float32)        # (b*n, 2*inner) f32
    qk = qk.astype(matmul_dtype)          # operands of the score matmul

    # ---- hoisted V projection (depends on j only, shared by every batch) -----
    # (attn @ x[j,h]) @ W_out_h == attn @ (x[j,h] @ W_out_h): compute once per j.
    w_out = w_out_ref[...]
    vproj = []
    for h in range(heads):
        vp = jnp.dot(
            x_v_ref[h].astype(matmul_dtype),
            w_out[h * dim_head:(h + 1) * dim_head, :].astype(matmul_dtype),
            preferred_element_type=jnp.float32)             # (n, dim) f32
        vproj.append(vp.astype(matmul_dtype))

    # Accumulator starts from the broadcast bias (saves a zeros tile + add);
    # hoisted out of the loops so the broadcast is materialized once.
    bias_tile = jnp.broadcast_to(b_out_ref[...].astype(jnp.float32), (n, dim))

    # ---- per (batch, head) attention, unrolled at trace time -----------------
    for i in range(b):
        qk_i = qk[i * n:(i + 1) * n, :]
        y = bias_tile
        for h in range(heads):
            # TODO(synk): per-head 32-lane slices of qk cost a little lane-select
            # work; with many heads keep q/k in head-major lane-aligned buffers.
            q_h = qk_i[:, h * dim_head:(h + 1) * dim_head]                  # (n, dh)
            k_h = qk_i[:, inner + h * dim_head:inner + (h + 1) * dim_head]  # (n, dh)
            # q @ k^T via dot_general contracting last dims (no physical k.T).
            s = lax.dot_general(q_h, k_h, (((1,), (1,)), ((), ())),
                                preferred_element_type=jnp.float32) * scale
            s = s - jnp.max(s, axis=-1, keepdims=True)      # f32 softmax
            e = jnp.exp(s)
            # EUP approximate reciprocal instead of a VALU divide (~1e-4 rel err).
            attn = e * pl.reciprocal(jnp.sum(e, axis=-1, keepdims=True),
                                     approx=True)
            y = y + jnp.dot(attn.astype(matmul_dtype), vproj[h],
                            preferred_element_type=jnp.float32)
        # Lane-packed output block: batch i occupies lanes [i*dim, (i+1)*dim) of
        # this patch's (n, b*dim) slab -> one contiguous write-back DMA per patch.
        # TODO(synk): once b*dim >= 128, concatenate the per-batch results and
        # issue a single unmasked wide store instead of b masked sub-stores.
        o_ref[:, i * dim:(i + 1) * dim] = y.astype(o_ref.dtype)


# --------------------------------------------------------------------------- #
# Parameters + forward wrapper
# --------------------------------------------------------------------------- #
def init_parrellel_attention_params(key, dim, heads, dim_head):
    inner_dim = dim_head * heads
    project_out = not (heads == 1 and dim_head == dim)
    k1, k2, k3 = jax.random.split(key, 3)
    params = {
        # stored as (in_features, out_features) so x @ w == torch's x @ W.T
        "w_qkv": 0.05 * jax.random.normal(k1, (dim, inner_dim * 2), jnp.float32),
    }
    if project_out:
        params["w_out"] = 0.05 * jax.random.normal(k2, (inner_dim, dim), jnp.float32)
        params["b_out"] = 0.05 * jax.random.normal(k3, (dim,), jnp.float32)
    return params, project_out


def parrellel_attention_forward(x, params, *, heads, dim_head, project_out,
                                matmul_dtype=jnp.bfloat16):
    b, p, n, dim = x.shape
    inner = heads * dim_head
    scale = dim_head ** (-0.5)

    # The PyTorch torch.matmul(attn, v) batch broadcast and the to_out Linear are
    # only well-formed (non-degenerate case) for b == p == heads and dim == dim_head.
    # TODO(synk): degenerate size-1 broadcast cases and the project_out=False
    # nn.Identity path are not implemented.
    assert heads == p and b == p, (b, p, heads)
    assert project_out and dim == dim_head, (dim, dim_head, project_out)

    kernel = functools.partial(_fused_attention_kernel, b=b, heads=heads,
                               dim_head=dim_head, scale=scale,
                               matmul_dtype=matmul_dtype)
    b_out2 = params["b_out"].reshape(1, dim)

    out_packed = pl.pallas_call(
        kernel,
        grid=(p,),                      # one step per patch j; all batches inside
        in_specs=[
            # q/k source: x[:, j]  (all batches of patch j).
            pl.BlockSpec((b, None, n, dim), lambda j: (0, j, 0, 0)),
            # V source: x[j] -- the (heads, n, dim) slab multiplied by attn[:, j].
            # Indexed by j only, so it is DMA'd once per patch, not once per (i, j).
            pl.BlockSpec((None, heads, n, dim), lambda j: (j, 0, 0, 0)),
            # Weights / bias: constant block index -> fetched once, VMEM-resident.
            pl.BlockSpec((dim, 2 * inner), lambda j: (0, 0)),
            pl.BlockSpec((inner, dim), lambda j: (0, 0)),
            pl.BlockSpec((1, dim), lambda j: (0, 0)),
        ],
        # Lane-packed output: out_packed[j, t, i*dim:(i+1)*dim] = out[i, j, t, :].
        out_specs=pl.BlockSpec((None, n, b * dim), lambda j: (j, 0, 0)),
        out_shape=jax.ShapeDtypeStruct((p, n, b * dim), x.dtype),
        compiler_params=pltpu.CompilerParams(
            dimension_semantics=("parallel",)),
    )(x, x, params["w_qkv"], params["w_out"], b_out2)

    # Un-pack lanes: (p, n, b, dim) -> (b, p, n, dim).  Pure layout plumbing.
    return out_packed.reshape(p, n, b, dim).transpose(2, 0, 1, 3)


# --------------------------------------------------------------------------- #
# Pure-JAX f32 reference (replicates the PyTorch forward, non-degenerate case)
# --------------------------------------------------------------------------- #
def parrellel_attention_reference(x, params, *, heads, dim_head):
    b, p, n, dim = x.shape
    scale = dim_head ** (-0.5)
    qk = x @ params["w_qkv"]                                    # (b,p,n,2*inner)
    q, k = jnp.split(qk, 2, axis=-1)
    q = q.reshape(b, p, n, heads, dim_head).transpose(0, 1, 3, 2, 4)
    k = k.reshape(b, p, n, heads, dim_head).transpose(0, 1, 3, 2, 4)
    dots = jnp.einsum("bphnd,bphmd->bphnm", q, k) * scale
    attn = jax.nn.softmax(dots, axis=-1)
    # torch.matmul(attn, v): v (b,p,n,dim) broadcasts as (1,b,p,n,dim), so
    # out[i, j, h] = attn[i, j, h] @ x[j, h].
    out = jnp.einsum("ijhnm,jhmd->ijhnd", attn, x)              # (b,p,h,n,dim)
    out = out.transpose(0, 1, 3, 2, 4).reshape(b, p, n, heads * dim)
    return out @ params["w_out"] + params["b_out"]


# --------------------------------------------------------------------------- #
if __name__ == "__main__":
    # Shapes chosen so the PyTorch module's forward is well-formed:
    #   heads == p == b  (required by the torch.matmul(attn, v) broadcast)
    #   dim == dim_head  (required by the to_out Linear)
    b, p, n = 2, 2, 8
    dim = 32
    heads = 2
    dim_head = 32

    key = jax.random.PRNGKey(0)
    kx, kp = jax.random.split(key)
    x = jax.random.normal(kx, (b, p, n, dim), jnp.float32)
    params, project_out = init_parrellel_attention_params(kp, dim, heads, dim_head)

    ref = parrellel_attention_reference(x, params, heads=heads, dim_head=dim_head)

    # f32 matmul path: bit-close parity with the PyTorch reference
    # (only the approx softmax reciprocal deviates, ~1e-4 relative).
    fwd_f32 = jax.jit(functools.partial(parrellel_attention_forward,
                                        heads=heads, dim_head=dim_head,
                                        project_out=project_out,
                                        matmul_dtype=jnp.float32))
    out_f32 = jax.block_until_ready(fwd_f32(x, params))
    assert out_f32.shape == (b, p, n, dim), out_f32.shape
    assert bool(jnp.all(jnp.isfinite(out_f32)))
    assert bool(jnp.allclose(out_f32, ref, atol=5e-3, rtol=5e-3)), float(
        jnp.max(jnp.abs(out_f32 - ref)))

    # bf16 matmul path (default): MXU-native operands, f32 accumulation.
    fwd_bf16 = jax.jit(functools.partial(parrellel_attention_forward,
                                         heads=heads, dim_head=dim_head,
                                         project_out=project_out))
    out_bf16 = jax.block_until_ready(fwd_bf16(x, params))
    assert out_bf16.shape == (b, p, n, dim), out_bf16.shape
    assert bool(jnp.all(jnp.isfinite(out_bf16)))
    assert float(jnp.max(jnp.abs(out_bf16 - ref))) < 0.1

    print("KERNEL_OK")
</pallas_src>

<mosaic_0001>
module attributes {stable_mosaic.version = 11 : i64} {
  func.func @_fused_attention_kernel(%arg0: i32, %arg1: memref<2x1x8x32xf32, #tpu.memory_space<vmem>>, %arg2: memref<1x2x8x32xf32, #tpu.memory_space<vmem>>, %arg3: memref<32x128xf32, #tpu.memory_space<vmem>>, %arg4: memref<64x32xf32, #tpu.memory_space<vmem>>, %arg5: memref<1x32xf32, #tpu.memory_space<vmem>>, %arg6: memref<1x8x64xf32, #tpu.memory_space<vmem>>) attributes {dimension_semantics = [#tpu.dimension_semantics<parallel>], iteration_bounds = array<i64: 2>, scalar_prefetch = 0 : i64, scratch_operands = 0 : i64, tpu.core_type = #tpu.core_type<tc>, window_params = [{transform_indices = @transform_0, window_bounds = array<i64: 2, 1, 8, 32>}, {transform_indices = @transform_1, window_bounds = array<i64: 1, 2, 8, 32>}, {pipeline_mode = #tpu.pipeline_mode<synchronous>, transform_indices = @transform_2, window_bounds = array<i64: 32, 128>}, {pipeline_mode = #tpu.pipeline_mode<synchronous>, transform_indices = @transform_3, window_bounds = array<i64: 64, 32>}, {pipeline_mode = #tpu.pipeline_mode<synchronous>, transform_indices = @transform_4, window_bounds = array<i64: 1, 32>}, {transform_indices = @transform_5, window_bounds = array<i64: 1, 8, 64>}]} {
    %c0 = arith.constant 0 : index
    %c0_0 = arith.constant 0 : index
    %c0_1 = arith.constant 0 : index
    %c0_2 = arith.constant 0 : index
    %0 = vector.load %arg1[%c0, %c0_0, %c0_1, %c0_2] : memref<2x1x8x32xf32, #tpu.memory_space<vmem>>, vector<2x1x8x32xf32>
    %1 = vector.shape_cast %0 : vector<2x1x8x32xf32> to vector<2x8x32xf32>
    %2 = vector.shape_cast %1 : vector<2x8x32xf32> to vector<16x32xf32>
    %c0_3 = arith.constant 0 : index
    %c0_4 = arith.constant 0 : index
    %3 = vector.load %arg3[%c0_3, %c0_4] : memref<32x128xf32, #tpu.memory_space<vmem>>, vector<32x128xf32>
    %cst = arith.constant dense<0.000000e+00> : vector<16x128xf32>
    %4 = tpu.matmul %2, %3, %cst {dimension_numbers = #tpu.dot_dimension_numbers<[1], [0], [0], [1], [0, 0, 1, 1], [], []>} : vector<16x32xf32>, vector<32x128xf32>, vector<16x128xf32> -> vector<16x128xf32>
    %c0_5 = arith.constant 0 : index
    %c0_6 = arith.constant 0 : index
    %5 = vector.load %arg4[%c0_5, %c0_6] : memref<64x32xf32, #tpu.memory_space<vmem>>, vector<64x32xf32>
    %c0_7 = arith.constant 0 : index
    %c0_8 = arith.constant 0 : index
    %c0_9 = arith.constant 0 : index
    %c0_10 = arith.constant 0 : index
    %6 = vector.load %arg2[%c0_7, %c0_8, %c0_9, %c0_10] : memref<1x2x8x32xf32, #tpu.memory_space<vmem>>, vector<1x1x8x32xf32>
    %7 = vector.shape_cast %6 : vector<1x1x8x32xf32> to vector<8x32xf32>
    %8 = vector.extract_strided_slice %5 {offsets = [0, 0], sizes = [32, 32], strides = [1, 1]} : vector<64x32xf32> to vector<32x32xf32>
    %cst_11 = arith.constant dense<0.000000e+00> : vector<8x32xf32>
    %9 = tpu.matmul %7, %8, %cst_11 {dimension_numbers = #tpu.dot_dimension_numbers<[1], [0], [0], [1], [0, 0, 1, 1], [], []>} : vector<8x32xf32>, vector<32x32xf32>, vector<8x32xf32> -> vector<8x32xf32>
    %c0_12 = arith.constant 0 : index
    %c1 = arith.constant 1 : index
    %c0_13 = arith.constant 0 : index
    %c0_14 = arith.constant 0 : index
    %10 = vector.load %arg2[%c0_12, %c1, %c0_13, %c0_14] : memref<1x2x8x32xf32, #tpu.memory_space<vmem>>, vector<1x1x8x32xf32>
    %11 = vector.shape_cast %10 : vector<1x1x8x32xf32> to vector<8x32xf32>
    %12 = vector.extract_strided_slice %5 {offsets = [32, 0], sizes = [32, 32], strides = [1, 1]} : vector<64x32xf32> to vector<32x32xf32>
    %cst_15 = arith.constant dense<0.000000e+00> : vector<8x32xf32>
    %13 = tpu.matmul %11, %12, %cst_15 {dimension_numbers = #tpu.dot_dimension_numbers<[1], [0], [0], [1], [0, 0, 1, 1], [], []>} : vector<8x32xf32>, vector<32x32xf32>, vector<8x32xf32> -> vector<8x32xf32>
    %c0_16 = arith.constant 0 : index
    %c0_17 = arith.constant 0 : index
    %14 = vector.load %arg5[%c0_16, %c0_17] : memref<1x32xf32, #tpu.memory_space<vmem>>, vector<1x32xf32>
    %15 = vector.shape_cast %14 : vector<1x32xf32> to vector<1x32xf32>
    %16 = vector.broadcast %15 : vector<1x32xf32> to vector<8x32xf32>
    %17 = vector.extract_strided_slice %4 {offsets = [0, 0], sizes = [8, 128], strides = [1, 1]} : vector<16x128xf32> to vector<8x128xf32>
    %18 = vector.extract_strided_slice %17 {offsets = [0, 0], sizes = [8, 32], strides = [1, 1]} : vector<8x128xf32> to vector<8x32xf32>
    %19 = vector.extract_strided_slice %17 {offsets = [0, 64], sizes = [8, 32], strides = [1, 1]} : vector<8x128xf32> to vector<8x32xf32>
    %cst_18 = arith.constant dense<0.000000e+00> : vector<8x8xf32>
    %20 = tpu.matmul %18, %19, %cst_18 {dimension_numbers = #tpu.dot_dimension_numbers<[1], [1], [0], [0], [0, 0, 1, 0], [], []>} : vector<8x32xf32>, vector<8x32xf32>, vector<8x8xf32> -> vector<8x8xf32>
    %cst_19 = arith.constant 0.176776692 : f32
    %21 = vector.broadcast %cst_19 : f32 to vector<8x8xf32>
    %22 = arith.mulf %20, %21 : vector<8x8xf32>
    %cst_20 = arith.constant dense<0xFF800000> : vector<8xf32>
    %23 = vector.multi_reduction <maximumf>, %22, %cst_20 [1] : vector<8x8xf32> to vector<8xf32>
    %24 = vector.shape_cast %23 : vector<8xf32> to vector<8x1xf32>
    %25 = vector.broadcast %24 : vector<8x1xf32> to vector<8x8xf32>
    %26 = arith.subf %22, %25 : vector<8x8xf32>
    %27 = math.exp %26 : vector<8x8xf32>
    %cst_21 = arith.constant dense<0.000000e+00> : vector<8xf32>
    %28 = vector.multi_reduction <add>, %27, %cst_21 [1] : vector<8x8xf32> to vector<8xf32>
    %29 = vector.shape_cast %28 : vector<8xf32> to vector<8x1xf32>
    %30 = tpu.reciprocal %29 {approx = true} : vector<8x1xf32> -> vector<8x1xf32>
    %31 = vector.broadcast %30 : vector<8x1xf32> to vector<8x8xf32>
    %32 = arith.mulf %27, %31 : vector<8x8xf32>
    %cst_22 = arith.constant dense<0.000000e+00> : vector<8x32xf32>
    %33 = tpu.matmul %32, %9, %cst_22 {dimension_numbers = #tpu.dot_dimension_numbers<[1], [0], [0], [1], [0, 0, 1, 1], [], []>} : vector<8x8xf32>, vector<8x32xf32>, vector<8x32xf32> -> vector<8x32xf32>
    %34 = arith.addf %16, %33 : vector<8x32xf32>
    %35 = vector.extract_strided_slice %17 {offsets = [0, 32], sizes = [8, 32], strides = [1, 1]} : vector<8x128xf32> to vector<8x32xf32>
    %36 = vector.extract_strided_slice %17 {offsets = [0, 96], sizes = [8, 32], strides = [1, 1]} : vector<8x128xf32> to vector<8x32xf32>
    %cst_23 = arith.constant dense<0.000000e+00> : vector<8x8xf32>
    %37 = tpu.matmul %35, %36, %cst_23 {dimension_numbers = #tpu.dot_dimension_numbers<[1], [1], [0], [0], [0, 0, 1, 0], [], []>} : vector<8x32xf32>, vector<8x32xf32>, vector<8x8xf32> -> vector<8x8xf32>
    %cst_24 = arith.constant 0.176776692 : f32
    %38 = vector.broadcast %cst_24 : f32 to vector<8x8xf32>
    %39 = arith.mulf %37, %38 : vector<8x8xf32>
    %cst_25 = arith.constant dense<0xFF800000> : vector<8xf32>
    %40 = vector.multi_reduction <maximumf>, %39, %cst_25 [1] : vector<8x8xf32> to vector<8xf32>
    %41 = vector.shape_cast %40 : vector<8xf32> to vector<8x1xf32>
    %42 = vector.broadcast %41 : vector<8x1xf32> to vector<8x8xf32>
    %43 = arith.subf %39, %42 : vector<8x8xf32>
    %44 = math.exp %43 : vector<8x8xf32>
    %cst_26 = arith.constant dense<0.000000e+00> : vector<8xf32>
    %45 = vector.multi_reduction <add>, %44, %cst_26 [1] : vector<8x8xf32> to vector<8xf32>
    %46 = vector.shape_cast %45 : vector<8xf32> to vector<8x1xf32>
    %47 = tpu.reciprocal %46 {approx = true} : vector<8x1xf32> -> vector<8x1xf32>
    %48 = vector.broadcast %47 : vector<8x1xf32> to vector<8x8xf32>
    %49 = arith.mulf %44, %48 : vector<8x8xf32>
    %cst_27 = arith.constant dense<0.000000e+00> : vector<8x32xf32>
    %50 = tpu.matmul %49, %13, %cst_27 {dimension_numbers = #tpu.dot_dimension_numbers<[1], [0], [0], [1], [0, 0, 1, 1], [], []>} : vector<8x8xf32>, vector<8x32xf32>, vector<8x32xf32> -> vector<8x32xf32>
    %51 = arith.addf %34, %50 : vector<8x32xf32>
    %c0_28 = arith.constant 0 : index
    %c0_29 = arith.constant 0 : index
    %c0_30 = arith.constant 0 : index
    %52 = vector.load %arg6[%c0_28, %c0_29, %c0_30] : memref<1x8x64xf32, #tpu.memory_space<vmem>>, vector<1x8x32xf32>
    %53 = vector.shape_cast %52 : vector<1x8x32xf32> to vector<8x32xf32>
    %54 = vector.shape_cast %51 : vector<8x32xf32> to vector<1x8x32xf32>
    tpu.vector_store %arg6[%c0_28, %c0_29, %c0_30], %54 {strides = array<i32>} : memref<1x8x64xf32, #tpu.memory_space<vmem>>, vector<1x8x32xf32>,
    %55 = vector.extract_strided_slice %4 {offsets = [8, 0], sizes = [8, 128], strides = [1, 1]} : vector<16x128xf32> to vector<8x128xf32>
    %56 = vector.extract_strided_slice %55 {offsets = [0, 0], sizes = [8, 32], strides = [1, 1]} : vector<8x128xf32> to vector<8x32xf32>
    %57 = vector.extract_strided_slice %55 {offsets = [0, 64], sizes = [8, 32], strides = [1, 1]} : vector<8x128xf32> to vector<8x32xf32>
    %cst_31 = arith.constant dense<0.000000e+00> : vector<8x8xf32>
    %58 = tpu.matmul %56, %57, %cst_31 {dimension_numbers = #tpu.dot_dimension_numbers<[1], [1], [0], [0], [0, 0, 1, 0], [], []>} : vector<8x32xf32>, vector<8x32xf32>, vector<8x8xf32> -> vector<8x8xf32>
    %cst_32 = arith.constant 0.176776692 : f32
    %59 = vector.broadcast %cst_32 : f32 to vector<8x8xf32>
    %60 = arith.mulf %58, %59 : vector<8x8xf32>
    %cst_33 = arith.constant dense<0xFF800000> : vector<8xf32>
    %61 = vector.multi_reduction <maximumf>, %60, %cst_33 [1] : vector<8x8xf32> to vector<8xf32>
    %62 = vector.shape_cast %61 : vector<8xf32> to vector<8x1xf32>
    %63 = vector.broadcast %62 : vector<8x1xf32> to vector<8x8xf32>
    %64 = arith.subf %60, %63 : vector<8x8xf32>
    %65 = math.exp %64 : vector<8x8xf32>
    %cst_34 = arith.constant dense<0.000000e+00> : vector<8xf32>
    %66 = vector.multi_reduction <add>, %65, %cst_34 [1] : vector<8x8xf32> to vector<8xf32>
    %67 = vector.shape_cast %66 : vector<8xf32> to vector<8x1xf32>
    %68 = tpu.reciprocal %67 {approx = true} : vector<8x1xf32> -> vector<8x1xf32>
    %69 = vector.broadcast %68 : vector<8x1xf32> to vector<8x8xf32>
    %70 = arith.mulf %65, %69 : vector<8x8xf32>
    %cst_35 = arith.constant dense<0.000000e+00> : vector<8x32xf32>
    %71 = tpu.matmul %70, %9, %cst_35 {dimension_numbers = #tpu.dot_dimension_numbers<[1], [0], [0], [1], [0, 0, 1, 1], [], []>} : vector<8x8xf32>, vector<8x32xf32>, vector<8x32xf32> -> vector<8x32xf32>
    %72 = arith.addf %16, %71 : vector<8x32xf32>
    %73 = vector.extract_strided_slice %55 {offsets = [0, 32], sizes = [8, 32], strides = [1, 1]} : vector<8x128xf32> to vector<8x32xf32>
    %74 = vector.extract_strided_slice %55 {offsets = [0, 96], sizes = [8, 32], strides = [1, 1]} : vector<8x128xf32> to vector<8x32xf32>
    %cst_36 = arith.constant dense<0.000000e+00> : vector<8x8xf32>
    %75 = tpu.matmul %73, %74, %cst_36 {dimension_numbers = #tpu.dot_dimension_numbers<[1], [1], [0], [0], [0, 0, 1, 0], [], []>} : vector<8x32xf32>, vector<8x32xf32>, vector<8x8xf32> -> vector<8x8xf32>
    %cst_37 = arith.constant 0.176776692 : f32
    %76 = vector.broadcast %cst_37 : f32 to vector<8x8xf32>
    %77 = arith.mulf %75, %76 : vector<8x8xf32>
    %cst_38 = arith.constant dense<0xFF800000> : vector<8xf32>
    %78 = vector.multi_reduction <maximumf>, %77, %cst_38 [1] : vector<8x8xf32> to vector<8xf32>
    %79 = vector.shape_cast %78 : vector<8xf32> to vector<8x1xf32>
    %80 = vector.broadcast %79 : vector<8x1xf32> to vector<8x8xf32>
    %81 = arith.subf %77, %80 : vector<8x8xf32>
    %82 = math.exp %81 : vector<8x8xf32>
    %cst_39 = arith.constant dense<0.000000e+00> : vector<8xf32>
    %83 = vector.multi_reduction <add>, %82, %cst_39 [1] : vector<8x8xf32> to vector<8xf32>
    %84 = vector.shape_cast %83 : vector<8xf32> to vector<8x1xf32>
    %85 = tpu.reciprocal %84 {approx = true} : vector<8x1xf32> -> vector<8x1xf32>
    %86 = vector.broadcast %85 : vector<8x1xf32> to vector<8x8xf32>
    %87 = arith.mulf %82, %86 : vector<8x8xf32>
    %cst_40 = arith.constant dense<0.000000e+00> : vector<8x32xf32>
    %88 = tpu.matmul %87, %13, %cst_40 {dimension_numbers = #tpu.dot_dimension_numbers<[1], [0], [0], [1], [0, 0, 1, 1], [], []>} : vector<8x8xf32>, vector<8x32xf32>, vector<8x32xf32> -> vector<8x32xf32>
    %89 = arith.addf %72, %88 : vector<8x32xf32>
    %c0_41 = arith.constant 0 : index
    %c0_42 = arith.constant 0 : index
    %c32 = arith.constant 32 : index
    %90 = vector.load %arg6[%c0_41, %c0_42, %c32] : memref<1x8x64xf32, #tpu.memory_space<vmem>>, vector<1x8x32xf32>
    %91 = vector.shape_cast %90 : vector<1x8x32xf32> to vector<8x32xf32>
    %92 = vector.shape_cast %89 : vector<8x32xf32> to vector<1x8x32xf32>
    tpu.vector_store %arg6[%c0_41, %c0_42, %c32], %92 {strides = array<i32>} : memref<1x8x64xf32, #tpu.memory_space<vmem>>, vector<1x8x32xf32>,
    return
  }
  func.func @transform_0(%arg0: i32) -> (i32, i32, i32, i32) {
    %c0_i32 = arith.constant 0 : i32
    %c0_i32_0 = arith.constant 0 : i32
    %c0_i32_1 = arith.constant 0 : i32
    %c0_i32_2 = arith.constant 0 : i32
    return %c0_i32, %arg0, %c0_i32_0, %c0_i32_1 : i32, i32, i32, i32
  }
  func.func @transform_1(%arg0: i32) -> (i32, i32, i32, i32) {
    %c0_i32 = arith.constant 0 : i32
    %c0_i32_0 = arith.constant 0 : i32
    %c0_i32_1 = arith.constant 0 : i32
    %c0_i32_2 = arith.constant 0 : i32
    return %arg0, %c0_i32, %c0_i32_0, %c0_i32_1 : i32, i32, i32, i32
  }
  func.func @transform_2(%arg0: i32) -> (i32, i32) {
    %c0_i32 = arith.constant 0 : i32
    %c0_i32_0 = arith.constant 0 : i32
    %c0_i32_1 = arith.constant 0 : i32
    return %c0_i32, %c0_i32_0 : i32, i32
  }
  func.func @transform_3(%arg0: i32) -> (i32, i32) {
    %c0_i32 = arith.constant 0 : i32
    %c0_i32_0 = arith.constant 0 : i32
    %c0_i32_1 = arith.constant 0 : i32
    return %c0_i32, %c0_i32_0 : i32, i32
  }
  func.func @transform_4(%arg0: i32) -> (i32, i32) {
    %c0_i32 = arith.constant 0 : i32
    %c0_i32_0 = arith.constant 0 : i32
    %c0_i32_1 = arith.constant 0 : i32
    return %c0_i32, %c0_i32_0 : i32, i32
  }
  func.func @transform_5(%arg0: i32) -> (i32, i32, i32) {
    %c0_i32 = arith.constant 0 : i32
    %c0_i32_0 = arith.constant 0 : i32
    %c0_i32_1 = arith.constant 0 : i32
    return %arg0, %c0_i32, %c0_i32_0 : i32, i32, i32
  }
}

</mosaic_0001>

<bundles_post_ra>
// kernel: parrellel_attention_forward.1
= control target key start
LH: loop header
LB: loop body
LE: loop exit
PB: predicated region body
PF: predicated region fallthrough
CT: control target
= control target key end

     0   :  { %s1535_s18 = smov 0   ;;  %s1537_s19 = smov 0   ;;  %s1699_s0 = inlined_call_operand.vmem [shape: f32[2,2,8,32], index: 0, kind: input, shape index: {}, may-alias: {0,1}]   ;;  %s1700_s1 = inlined_call_operand.vmem [shape: f32[2,2,8,32], index: 1, kind: input, shape index: {}, may-alias: {0,1}]   ;;  %s1701_s2 = inlined_call_operand.vmem [shape: f32[32,128], index: 2, kind: input, shape index: {}]   ;;  %s1702_s3 = inlined_call_operand.vmem [shape: f32[64,32], index: 3, kind: input, shape index: {}]   ;;  %s1703_s4 = inlined_call_operand.vmem [shape: f32[1,32], index: 4, kind: input, shape index: {}]   ;;  %s1704_s5 = inlined_call_operand.vmem [shape: f32[2,8,64], index: 5, kind: output, shape index: {}]  }
   0x1   :  { %s1539_s20 = smov 0  }
   0x2 LB: > { %s1266_s21 = sadd.s32 4294967295, %s1497_s20   ;;  %s1552_s22 = sadd.s32 1, %s1497_s20   ;;  %s1497_s20 = sphi %s1539_s20, %s1707_s20   ;;  %s1493_s19 = sphi %s1537_s19, %s1706_s19   ;;  %s1489_s18 = sphi %s1535_s18, %s1705_s18  }
   0x3   : > { %s19_s23 = ssub.s32 %s1497_s20, %s1552_s22  ;;  %s22_s24 = sadd.s32 1, %s1493_s19 }
   0x4   : > { %p20_p0 = scmp.eq.s32.totalorder %s19_s23, 0  ;;  %p29_p1 = scmp.ne.s32.totalorder %s1493_s19, %s1489_s18 }
   0x5   : > { %p30_p2 = scmp.eq.s32.totalorder %s1497_s20, 0  ;;  %p1269_p4 = scmp.ge.s32.totalorder %s1497_s20, 2 }
   0x6   : > { %s1561_s25 = scalar_select %p20_p0, %s1493_s19, %s22_s24  }
   0x7   : > { %p31_p3 = por %p30_p2, %p29_p1  ;;  %179 = sbr.rel (%p1269_p4) target bundleno = 21 (0x15), region = 28 }
   0xe   : > { %182 = sbr.rel (!%p31_p3) target bundleno = 21 (0x15), region = 32  ;;  %s184_s26 = sand.u32 (%p31_p3), 1, %s1493_s19  }
   0xf   : > { %s1271_s27 = sshll.u32 (%p31_p3), %s1497_s20, 3  ;;  %s1270_s28 = sshll.u32 (%p31_p3), %s184_s26, 4 }
  0x10   : > { %s188_s6 = scalar_lea.vmem (%p31_p3), %s1699_s0, %s1271_s27  ;;  %s186_s7 = scalar_lea.vmem (%p31_p3), [#allocation2], %s1270_s28 }
  0x11   : > { %v218_v0 = vld [vmem:[%s188_s6] sm:$0xff] (%p31_p3)  ;;  %v220_v1 = vld [vmem:[%s188_s6 + $0x10] sm:$0xff] (%p31_p3) }
  0x12   : > { %219 = vst [vmem:[%s186_s7] sm:$0xff] (%p31_p3), %v218_v0  ;;  %221 = vst [vmem:[%s186_s7 + $0x8] sm:$0xff] (%p31_p3), %v220_v1 }
  0x15 PF: > { %p1272_p5 = scmp.ge.s32.totalorder %s1497_s20, 1  ;;  %p234_p6 = scmp.lt.s32.totalorder %s1497_s20, 3 }
  0x17   : > { %p235_p7 = pnand %p1272_p5, %p234_p6 }
  0x18   : > { %v283_v2 = vld [vmem:[%s1701_s2] sm:$0xff] (!%p235_p7)  ;;  %v284_v3 = vld [vmem:[%s1701_s2 + $0x8] sm:$0xff] (!%p235_p7)  ;;  %v285_v4 = vld [vmem:[%s1701_s2 + $0x10] sm:$0xff] (!%p235_p7)  ;;  %s241_s14 = sand.u32 (!%p235_p7), 1, %s1489_s18   ;;  %vm287_vm0 = vcmask (!%p235_p7), 261120   ;;  %v1499_v13 = vmov (!%p235_p7), 0.0|0.0  }
  0x19   : > { %238 = sbr.rel (%p235_p7) target bundleno = 1244 (0x4dc), region = 74  ;;  %v1403_v5 = vpack.c.bf16 (!%p235_p7), %v284_v3, %v283_v2  ;;  %v286_v6 = vld [vmem:[%s1701_s2 + $0x18] sm:$0xff] (!%p235_p7)  ;;  %s1273_s17 = sshll.u32 (!%p235_p7), %s241_s14, 4  ;;  %v369_v10 = vld [vmem:[%s1702_s3] sm:$0xff] (!%p235_p7)  ;;  %v370_v11 = vld [vmem:[%s1702_s3 + $0x8] sm:$0xff] (!%p235_p7)  ;;  %1411 = vmatprep.subr.bf16.mxu1 (!%p235_p7), %v1499_v13  ;;  %vm1500_vm1 = vmmov (!%p235_p7), 0  }
  0x1a   : > { %v1407_v7 = vpack.c.bf16 (!%p235_p7), %v286_v6, %v285_v4  ;;  %s243_s23 = scalar_lea.vmem (!%p235_p7), [#allocation2], %s1273_s17  ;;  %v371_v12 = vld [vmem:[%s1702_s3 + $0x10] sm:$0xff] (!%p235_p7)  ;;  %v1412_v14 = vpack.c.bf16 (!%p235_p7), %v370_v11, %v369_v10  ;;  %v372_v15 = vld [vmem:[%s1702_s3 + $0x18] sm:$0xff] (!%p235_p7)  ;;  %v373_v16 = vld [vmem:[%s1702_s3 + $0x20] sm:$0xff] (!%p235_p7)  ;;  %p272_p8 = scmp.lt.s32.totalorder (!%p235_p7), %s1266_s21, 1  ;;  %v1501_v21 = vmov (!%p235_p7), 0.0  }
  0x1b   : > { %1404 = vmatprep.subr.bf16.mxu0 (!%p235_p7), %v1403_v5  ;;  %v281_v8 = vld [vmem:[%s243_s23] sm:$0xff] (!%p235_p7)  ;;  %v282_v9 = vld [vmem:[%s243_s23 + $0x8] sm:$0xff] (!%p235_p7)  ;;  %1349 = vmatprep.mubr.msk.f32.mxu1 (!%p235_p7), %vm1500_vm1, %v1501_v21  ;;  %v1415_v22 = vpack.c.bf16 (!%p235_p7), %v372_v15, %v371_v12  ;;  %s1502_s20 = smov (!%p235_p7), 96   ;;  %s1503_s18 = smov (!%p235_p7), 64   ;;  %vm611_vm2 = vcmask (!%p235_p7), 64512   ;;  %vm1193_vm3 = vcmask (!%p235_p7), 523520  }
  0x1c   : > { %1406 = vmatpush3.bf16.msra.mxu0 (!%p235_p7), %v1403_v5  ;;  %1338 = vmatprep.mubr.msk.f32.mxu0 (!%p235_p7), %vm287_vm0, %v281_v8  ;;  %v374_v17 = vld [vmem:[%s1702_s3 + $0x28] sm:$0xff] (!%p235_p7)  ;;  %v375_v19 = vld [vmem:[%s1702_s3 + $0x30] sm:$0xff] (!%p235_p7)  ;;  %v376_v20 = vld [vmem:[%s1702_s3 + $0x38] sm:$0xff] (!%p235_p7)  ;;  %s1504_s24 = smov (!%p235_p7), 32  }
  0x1d   : > { %1408 = vmatprep.subr.bf16.mxu0 (!%p235_p7), %v1407_v7  ;;  %v1418_v18 = vpack.c.bf16 (!%p235_p7), %v374_v17, %v373_v16  ;;  %1413 = vmatpush3.bf16.msra.mxu1 (!%p235_p7), %v1412_v14  ;;  %v1421_v23 = vpack.c.bf16 (!%p235_p7), %v376_v20, %v375_v19 }
  0x1e   : > { %1414 = vmatprep.subr.bf16.mxu1 (!%p235_p7), %v1499_v13 }
  0x20   : > { %1410 = vmatpush3.bf16.msra.mxu0 %v1407_v7  ;;  %s1709_s21 = smov (!%p272_p8, %s1266_s21), 1 }
  0x21   : > { %1417 = vmatprep.subr.bf16.mxu0 %v1499_v13  ;;  %s1297_s15 = sshll.u32 %s1709_s21, 4  ;;  %1416 = vmatpush3.bf16.msra.mxu1 %v1415_v22  ;;  %s1276_s26 = sshll.u32 %s1709_s21, 3 }
  0x22   : > { %s276_s23 = scalar_lea.vmem %s1700_s1, %s1297_s15  ;;  %1363 = vmatprep.subr.mxu1 %v1501_v21  ;;  %s280_s6 = scalar_lea.vmem %s1704_s5, %s1276_s26 }
  0x23   : > { %1339 = vmatmul.mubr.msk.f32.vlgmr.msra.gmra.mrb[0].mxu0 %vm287_vm0, %v282_v9  ;;  %v377_v24 = vld [vmem:[%s276_s23] sm:$0xff]  ;;  %v1280_v25 = vld [vmem:[%s276_s23 + $0x8] sm:$0xff] }
  0x24   : > { %1360 = vmatprep.mubr.msk.f32.mxu0 %vm1500_vm1, %v1501_v21  ;;  %1419 = vmatpush3.bf16.msra.mxu0 %v1418_v18 }
  0x25   : > { %1420 = vmatprep.subr.bf16.mxu0 %v1499_v13  ;;  %1350 = vmatmul.mubr.msk.f32.vlgmr.msra.gmra.mrb[0].mxu1 %vm287_vm0, %v377_v24 }
  0x26   : > { %1365 = vmatprep.mubr.msk.f32.mxu1 %vm1500_vm1, %v1501_v21 }
  0x28   : > { %1422 = vmatpush3.bf16.msra.mxu0 %v1421_v23  ;;  %v1282_v23 = vld [vmem:[%s1703_s4] ss:$0 sm:$0xff] }
  0x29   : > { %1373 = vmatprep.subr.mxu0 %v1501_v21 }
  0x2b   : > { %1361 = vmatmul.mubr.msk.f32.vlgmr.msra.gmra.mrb[2].mxu0 %vm287_vm0, %v1280_v25 }
  0x2c   : > { %1375 = vmatprep.mubr.msk.f32.mxu0 %vm1500_vm1, %v1501_v21 }
  0xf6   : > { %v1340_v26 = vpop.f32.mrb[0].mxu0 }
  0xf7   : > { %v360_v27 = vpop.f32.mrb[1].mxu0 }
  0xf8   : > { %697 = vrot.lane.b32.xlu1 %v360_v27, %s1502_s20  ;;  %534 = vrot.lane.b32.xlu0 %v360_v27, %s1503_s18  ;;  %v1634_v28 = vpop.f32.mrb[0].mxu1 }
  0xf9   : > { %v1351_v29 = vpop.f32.mrb[1].mxu1 }
  0xfc   : > { %863 = vrot.lane.b32.xlu1 %v1340_v26, %s1503_s18  ;;  %699 = vrot.lane.b32.xlu0 %v360_v27, %s1504_s24 }
  0xfe   : > { %v1655_v36 = vpop.f32.mrb[2].mxu0 }
  0xff   : > { %v1362_v37 = vpop.f32.mrb[3].mxu0 }
 0x100   : > { %1025 = vrot.lane.b32.xlu1 %v1340_v26, %s1502_s20  ;;  %1027 = vrot.lane.b32.xlu0 %v1340_v26, %s1504_s24 }
 0x16a   : > { %v535_v30 = vpop.permute.xlu0 %534  ;;  %v698_v31 = vpop.permute.xlu1 %697 }
 0x16b   : > { %1364 = vmatpush3.xpose.msk.msra.mxu1 %vm287_vm0, %v535_v30 }
 0x16c   : > { %1368 = vmatprep.subr.mxu1 %v1501_v21 }
 0x16e   : > { %1366 = vmatmul.mubr.msk.f32.vlgmr.msra.gmra.mrb[2].mxu1 %vm287_vm0, %v360_v27  ;;  %v700_v32 = vpop.permute.xlu0 %699  ;;  %v864_v33 = vpop.permute.xlu1 %863 }
 0x16f   : > { %1374 = vmatpush3.xpose.msk.msra.mxu0 %vm287_vm0, %v700_v32  ;;  %1369 = vmatpush3.msra.mxu1 %v1634_v28 }
 0x170   : > { %1383 = vmatprep.subr.mxu0 %v1501_v21  ;;  %1370 = vmatprep.mubr.msk.f32.mxu1 %vm1500_vm1, %v1501_v21 }
 0x171   : > { %1378 = vmatprep.subr.mxu1 %v1501_v21 }
 0x172   : > { %1376 = vmatmul.mubr.msk.f32.vlgmr.msra.gmra.mrb[4].mxu0 %vm287_vm0, %v698_v31  ;;  %v1028_v34 = vpop.permute.xlu0 %1027  ;;  %v1026_v35 = vpop.permute.xlu1 %1025 }
 0x173   : > { %1384 = vmatpush3.xpose.msk.msra.mxu0 %vm287_vm0, %v864_v33  ;;  %1385 = vmatprep.mubr.msk.f32.mxu0 %vm1500_vm1, %v1501_v21 }
 0x174   : > { %1393 = vmatprep.subr.mxu0 %v1501_v21 }
 0x176   : > { %1386 = vmatmul.mubr.msk.f32.vlgmr.msra.gmra.mrb[6].mxu0 %vm287_vm0, %v1340_v26 }
 0x177   : > { %1394 = vmatpush3.xpose.msk.msra.mxu0 %vm287_vm0, %v1028_v34  ;;  %1395 = vmatprep.mubr.msk.f32.mxu0 %vm1500_vm1, %v1501_v21 }
 0x17a   : > { %1396 = vmatmul.mubr.msk.f32.vlgmr.msra.gmra.mrb[8].mxu0 %vm287_vm0, %v1026_v35 }
 0x241   : > { %v606_v38 = vpop.f32.mrb[2].mxu1 }
 0x242   : > { %v610_v39 = vmul.f32 0.17677669, %v606_v38  ;;  %v1367_v40 = vpop.f32.mrb[3].mxu1 }
 0x244   : > { %v612_v41 = vsel %vm611_vm2, %v610_v39, -inf }
 0x245   : > { %613 = vmax.xlane.f32.xlu0 %v612_v41  ;;  %v771_v42 = vpop.f32.mrb[4].mxu0 }
 0x246   : > { %v775_v43 = vmul.f32 0.17677669, %v771_v42  ;;  %v1377_v44 = vpop.f32.mrb[5].mxu0 }
 0x248   : > { %v776_v45 = vsel %vm611_vm2, %v775_v43, -inf }
 0x249   : > { %777 = vmax.xlane.f32.xlu1 %v776_v45  ;;  %v935_v46 = vpop.f32.mrb[6].mxu0 }
 0x24a   : > { %v939_v47 = vmul.f32 0.17677669, %v935_v46  ;;  %v1387_v48 = vpop.f32.mrb[7].mxu0 }
 0x24c   : > { %v940_v49 = vsel %vm611_vm2, %v939_v47, -inf }
 0x24d   : > { %941 = vmax.xlane.f32.xlu0 %v940_v49  ;;  %v1099_v50 = vpop.f32.mrb[8].mxu0 }
 0x24e   : > { %v1103_v51 = vmul.f32 0.17677669, %v1099_v50  ;;  %v1397_v52 = vpop.f32.mrb[9].mxu0 }
 0x250   : > { %v1104_v53 = vsel %vm611_vm2, %v1103_v51, -inf }
 0x251   : > { %1105 = vmax.xlane.f32.xlu0 %v1104_v53 }
 0x2d2   : > { %v614_v54 = vpop.xlane.xlu0 %613 }
 0x2d3   : > { %v615_v55 = vsub.f32 %v610_v39, %v614_v54 }
 0x2d5   : > { %v616_v56 = vmul.f32 1.442695, %v615_v55 }
 0x2d6   : > { %v778_v57 = vpop.xlane.xlu1 %777 }
 0x2d7   : > { %1459 = vpow2.f32 %v616_v56  ;;  %v779_v58 = vsub.f32 %v775_v43, %v778_v57 }
 0x2d9   : > { %v780_v59 = vmul.f32 1.442695, %v779_v58 }
 0x2da   : > { %v942_v60 = vpop.xlane.xlu0 %941 }
 0x2db   : > { %1461 = vpow2.f32 %v780_v59  ;;  %v943_v61 = vsub.f32 %v939_v47, %v942_v60 }
 0x2dd   : > { %v944_v62 = vmul.f32 1.442695, %v943_v61 }
 0x2de   : > { %v1106_v63 = vpop.xlane.xlu0 %1105 }
 0x2df   : > { %1463 = vpow2.f32 %v944_v62  ;;  %v1107_v0 = vsub.f32 %v1103_v51, %v1106_v63 }
 0x2e1   : > { %v1460_v1 = vpop.eup %1459  ;;  %v1108_v2 = vmul.f32 1.442695, %v1107_v0 }
 0x2e2   : > { %v618_v3 = vsel %vm611_vm2, %v1460_v1, 0.0 }
 0x2e3   : > { %1465 = vpow2.f32 %v1108_v2  ;;  %619 = vadd.xlane.f32.xlu1 %v618_v3 }
 0x2e5   : > { %v1462_v4 = vpop.eup %1461 }
 0x2e6   : > { %v782_v5 = vsel %vm611_vm2, %v1462_v4, 0.0 }
 0x2e7   : > { %783 = vadd.xlane.f32.xlu0 %v782_v5 }
 0x2e9   : > { %v1464_v6 = vpop.eup %1463 }
 0x2ea   : > { %v946_v7 = vsel %vm611_vm2, %v1464_v6, 0.0 }
 0x2eb   : > { %947 = vadd.xlane.f32.xlu1 %v946_v7 }
 0x2ed   : > { %v1466_v8 = vpop.eup %1465 }
 0x2ee   : > { %v1110_v9 = vsel %vm611_vm2, %v1466_v8, 0.0 }
 0x2ef   : > { %1111 = vadd.xlane.f32.xlu0 %v1110_v9 }
 0x370   : > { %v620_v10 = vpop.xlane.xlu1 %619 }
 0x371   : > { %1467 = vrcp.f32 %v620_v10 }
 0x374   : > { %v784_v11 = vpop.xlane.xlu0 %783 }
 0x375   : > { %1469 = vrcp.f32 %v784_v11 }
 0x378   : > { %v948_v12 = vpop.xlane.xlu1 %947 }
 0x379   : > { %1471 = vrcp.f32 %v948_v12 }
 0x37b   : > { %v1468_v13 = vpop.eup %1467 }
 0x37c   : > { %v622_v14 = vmul.f32 %v1468_v13, %v1460_v1  ;;  %v1112_v15 = vpop.xlane.xlu0 %1111 }
 0x37d   : > { %1473 = vrcp.f32 %v1112_v15 }
 0x37e   : > { %1371 = vmatmul.mubr.msk.f32.vlgmr.msra.gmra.mrb[4].mxu1 %vm611_vm2, %v622_v14 }
 0x37f   : > { %1379 = vmatpush3.msra.mxu1 %v1655_v36  ;;  %1380 = vmatprep.mubr.msk.f32.mxu1 %vm1500_vm1, %v1501_v21  ;;  %v1470_v16 = vpop.eup %1469 }
 0x380   : > { %1388 = vmatprep.subr.mxu1 %v1501_v21  ;;  %v786_v17 = vmul.f32 %v1470_v16, %v1462_v4 }
 0x383   : > { %v1472_v18 = vpop.eup %1471 }
 0x384   : > { %v950_v19 = vmul.f32 %v1472_v18, %v1464_v6 }
 0x386   : > { %1381 = vmatmul.mubr.msk.f32.vlgmr.msra.gmra.mrb[4].mxu1 %vm611_vm2, %v786_v17 }
 0x387   : > { %1389 = vmatpush3.msra.mxu1 %v1634_v28  ;;  %1390 = vmatprep.mubr.msk.f32.mxu1 %vm1500_vm1, %v1501_v21  ;;  %v1474_v20 = vpop.eup %1473 }
 0x388   : > { %1398 = vmatprep.subr.mxu1 %v1501_v21  ;;  %v1114_v22 = vmul.f32 %v1474_v20, %v1466_v8 }
 0x38a   : > { %1391 = vmatmul.mubr.msk.f32.vlgmr.msra.gmra.mrb[6].mxu1 %vm611_vm2, %v950_v19 }
 0x38b   : > { %1399 = vmatpush3.msra.mxu1 %v1655_v36  ;;  %1400 = vmatprep.mubr.msk.f32.mxu1 %vm1500_vm1, %v1501_v21 }
 0x392   : > { %1401 = vmatmul.mubr.msk.f32.vlgmr.msra.gmra.mrb[6].mxu1 %vm611_vm2, %v1114_v22 }
 0x459   : > { %v856_v24 = vpop.f32.mrb[4].mxu1 }
 0x45a   : > { %v1423_v25 = vadd.f32 %v1282_v23, %v856_v24  ;;  %v1382_v26 = vpop.f32.mrb[5].mxu1 }
 0x45c   : > { %861 = vst.msk [vmem:[%s280_s6] sm:$0xff] %vm287_vm0, %v1423_v25 }
 0x465   : > { %v1184_v27 = vpop.f32.mrb[6].mxu1 }
 0x466   : > { %v1424_v21 = vadd.f32 %v1282_v23, %v1184_v27  ;;  %v1402_v28 = vpop.f32.mrb[7].mxu1 }
 0x468   : > { %1190 = vrot.lane.b32.xlu1 %v1424_v21, %s1504_s24 }
 0x4da   : > { %v1191_v29 = vpop.permute.xlu1 %1190 }
 0x4db   : > { %1194 = vst.msk [vmem:[%s280_s6] sm:$0xff] %vm1193_vm3, %v1191_v29 }
 0x4dc PF: > { %p12_p9 = scmp.ge.s32.totalorder %s1552_s22, 4   ;;  %s1705_s18 = smov %s1493_s19 }
 0x4dd   : > { %s1706_s19 = smov %s1561_s25  ;;  %s1707_s20 = smov %s1552_s22 }
 0x4de   :  { %14 = sbr.rel (!%p12_p9) target bundleno = 2 (0x2), region = 117 }

</bundles_post_ra>
